<compile_context>
chip_gen: v6e
topology: v6e:2x2x1
jax: 0.10.0
libtpu: 0.0.40
codegen_flags: <defaults>
</compile_context>

<pallas_src>
import functools

import jax
import jax.numpy as jnp
from jax.experimental import pallas as pl
from jax.experimental.pallas import tpu as pltpu


def _attention_kernel(x_ref, mask_ref, gamma_ref, beta_ref, wqkv_ref, wout_ref,
                      out_ref, attn_ref, *, heads, dim_head, eps):
    # x_ref:     (Bb, N, D)   f32 activation block (Bb batches per grid step)
    # mask_ref:  (Bb, 1, N)   f32 0/1, 1 == masked key position
    # gamma/beta:(1, D)       f32 LayerNorm affine params (untiled VMEM)
    # wqkv_ref:  (D, 3*H*Dh)  bf16 fused QKV weight, q-scale folded in
    # wout_ref:  (H*Dh, D)    bf16 output projection weight
    # out_ref:   (Bb, N, D)   f32
    # attn_ref:  (Bb, H, N, N) attn_dtype
    bb, n, d = x_ref.shape
    inner = heads * dim_head
    m_rows = bb * n

    # --- LayerNorm over last dim (torch default eps=1e-5, biased variance) ---
    x = x_ref[...].reshape(m_rows, d)                       # (M, D) f32
    mean = jnp.mean(x, axis=-1, keepdims=True)
    var = jnp.mean((x - mean) ** 2, axis=-1, keepdims=True)
    xn = (x - mean) * jax.lax.rsqrt(var + eps)
    xn = xn * gamma_ref[...] + beta_ref[...]                # (M, D) f32

    # --- Fused Q/K/V projection: ONE MXU matmul, 3*inner output lanes -------
    qkv = jnp.dot(xn.astype(jnp.bfloat16), wqkv_ref[...],
                  preferred_element_type=jnp.float32)       # (M, 3*inner) f32
    qkv = qkv.reshape(bb, n, 3 * inner).astype(jnp.bfloat16)  # single cast

    # Additive key mask, computed once and reused for every head.
    neg = jnp.where(mask_ref[...] > 0.0,
                    jnp.float32(-1e30), jnp.float32(0.0))   # (Bb, 1, N)

    # --- Per-head attention.  Scores are inherently per-(batch, head) on the
    # MXU; static 16-lane slices of the fused qkv avoid any 4-D transpose. ---
    ctx_parts = []
    for h in range(heads):
        off = h * dim_head
        q_h = qkv[:, :, off:off + dim_head]                     # (Bb, N, Dh) bf16
        k_h = qkv[:, :, inner + off:inner + off + dim_head]
        v_h = qkv[:, :, 2 * inner + off:2 * inner + off + dim_head]

        sim = jnp.einsum("bid,bjd->bij", q_h, k_h,
                         preferred_element_type=jnp.float32)    # (Bb, N, N) f32
        sim = sim + neg

        # Numerically stable softmax in f32; reciprocal on the EUP slot.
        m = jnp.max(sim, axis=-1, keepdims=True)
        e = jnp.exp(sim - m)
        attn = e * pl.reciprocal(jnp.sum(e, axis=-1, keepdims=True), approx=True)
        attn_ref[:, h, :, :] = attn.astype(attn_ref.dtype)

        # TODO(synk): dropout is identity here (module default p=0.0 / eval).
        ctx_parts.append(
            jnp.einsum("bij,bjd->bid", attn.astype(jnp.bfloat16), v_h,
                       preferred_element_type=jnp.float32))     # (Bb, N, Dh) f32

    # --- Fused output projection: concat(heads) @ W_out, K = H*Dh -----------
    ctx = jnp.concatenate(ctx_parts, axis=-1)               # (Bb, N, inner) f32
    ctx = ctx.reshape(m_rows, inner).astype(jnp.bfloat16)   # single cast
    out = jnp.dot(ctx, wout_ref[...],
                  preferred_element_type=jnp.float32)       # (M, D) f32
    out_ref[...] = out.reshape(bb, n, d).astype(out_ref.dtype)


def _pick_block_b(b, n, heads, attn_itemsize,
                  target_rows=128, attn_vmem_cap=8 * 1024 * 1024):
    """Batch-block size: fill >=128 MXU rows per grid step when the batch
    allows, while keeping the (double-buffered) attn output block within a
    VMEM budget (conservative enough for v7x's 64 MiB / 32 MiB scoped)."""
    best = 1
    for d in range(1, b + 1):
        if b % d:
            continue
        if 2 * d * heads * n * n * attn_itemsize > attn_vmem_cap:
            break
        best = d
        if d * n >= target_rows:
            break
    return best


def attention_forward(x, mask_list, params, *, heads, dim_head,
                      attn_dtype=jnp.float32):
    """Pallas forward. x: (B, N, D) f32, mask_list: (B, N) bool."""
    b, n, dim = x.shape
    inner = heads * dim_head
    scale = dim_head ** (-0.5)

    # ---- one-time host-side weight prep (layout plumbing, free at runtime) --
    w_qkv_t = params["w_qkv_t"]                      # (D, 3*inner), cols (q|k|v, h, dh)
    w_qkv_fused = jnp.concatenate(
        [w_qkv_t[:, :inner] * scale,                 # fold q scale into Q columns
         w_qkv_t[:, inner:]], axis=1).astype(jnp.bfloat16)
    w_out = params["w_out_t"].astype(jnp.bfloat16)   # (inner, D), rows (h, dh)

    mask_f = mask_list.astype(jnp.float32).reshape(b, 1, n)

    block_b = _pick_block_b(b, n, heads, jnp.dtype(attn_dtype).itemsize)
    grid = (b // block_b,)
    # NOTE: at production sizes prefer a grid length that is a multiple of 2
    # so both v7x TensorCores get work (no effect on single-TC v5e/v6e).

    kernel = functools.partial(_attention_kernel,
                               heads=heads, dim_head=dim_head, eps=1e-5)
    vmem = pltpu.MemorySpace.VMEM   # untiled, resident, single-buffered params

    out, attn = pl.pallas_call(
        kernel,
        out_shape=(
            jax.ShapeDtypeStruct((b, n, dim), jnp.float32),
            jax.ShapeDtypeStruct((b, heads, n, n), attn_dtype),
        ),
        grid_spec=pltpu.PrefetchScalarGridSpec(
            num_scalar_prefetch=0,
            grid=grid,
            in_specs=[
                pl.BlockSpec((block_b, n, dim), lambda i: (i, 0, 0)),   # x
                pl.BlockSpec((block_b, 1, n), lambda i: (i, 0, 0)),     # mask
                pl.BlockSpec(memory_space=vmem),                        # gamma
                pl.BlockSpec(memory_space=vmem),                        # beta
                pl.BlockSpec(memory_space=vmem),                        # W_qkv (fused, scaled)
                pl.BlockSpec(memory_space=vmem),                        # W_out
            ],
            out_specs=[
                pl.BlockSpec((block_b, n, dim), lambda i: (i, 0, 0)),           # out
                pl.BlockSpec((block_b, heads, n, n), lambda i: (i, 0, 0, 0)),   # attn
            ],
        ),
        compiler_params=pltpu.CompilerParams(
            dimension_semantics=("parallel",),
        ),
    )(x, mask_f, params["gamma"], params["beta"], w_qkv_fused, w_out)
    return out, attn


def _reference_forward(x, mask_list, params, *, heads, dim_head):
    """Pure-JAX f32 reference mirroring the PyTorch module, for verification."""
    b, n, dim = x.shape
    inner = heads * dim_head
    scale = dim_head ** (-0.5)

    mean = jnp.mean(x, axis=-1, keepdims=True)
    var = jnp.mean((x - mean) ** 2, axis=-1, keepdims=True)
    xn = (x - mean) / jnp.sqrt(var + 1e-5)
    xn = xn * params["gamma"][0] + params["beta"][0]

    qkv = xn @ params["w_qkv_t"]
    q, k, v = jnp.split(qkv, 3, axis=-1)

    def split_heads(t):
        return jnp.transpose(t.reshape(b, n, heads, dim_head), (0, 2, 1, 3))

    q, k, v = map(split_heads, (q, k, v))
    q = q * scale
    sim = jnp.einsum("bhid,bhjd->bhij", q, k)
    add = jnp.where(mask_list[:, None, None, :], -jnp.inf, 0.0)
    sim = sim + add
    attn = jax.nn.softmax(sim, axis=-1)
    out = jnp.einsum("bhij,bhjd->bhid", attn, v)
    out = jnp.transpose(out, (0, 2, 1, 3)).reshape(b, n, inner)
    out = out @ params["w_out_t"]
    return out, attn


if __name__ == "__main__":
    # Small shapes consistent with the module.
    B, N, DIM = 2, 8, 32
    HEADS, DIM_HEAD = 4, 16
    INNER = HEADS * DIM_HEAD

    key = jax.random.PRNGKey(0)
    kx, kq, ko = jax.random.split(key, 3)

    x = jax.random.normal(kx, (B, N, DIM), dtype=jnp.float32)
    # Boolean key mask: True = masked out; keep at least one unmasked key/row.
    mask_list = jnp.array(
        [[False, False, True, False, True, False, False, False],
         [False, True, False, False, False, False, True, False]], dtype=jnp.bool_
    )

    params = {
        "gamma": jnp.ones((1, DIM), jnp.float32),
        "beta": jnp.zeros((1, DIM), jnp.float32),
        # nn.Linear weight is (out, in); kernel wants (in, out), so init & transpose.
        "w_qkv_t": (jax.random.normal(kq, (3 * INNER, DIM), jnp.float32) * 0.05).T,
        "w_out_t": (jax.random.normal(ko, (DIM, INNER), jnp.float32) * 0.05).T,
    }

    out, attn = attention_forward(x, mask_list, params, heads=HEADS, dim_head=DIM_HEAD)
    out, attn = jax.block_until_ready((out, attn))

    out_ref, attn_ref = _reference_forward(x, mask_list, params,
                                           heads=HEADS, dim_head=DIM_HEAD)
    assert out.shape == (B, N, DIM) and attn.shape == (B, HEADS, N, N)
    # Tolerances cover bf16 MXU operands and the approx EUP reciprocal
    # (LayerNorm / softmax arithmetic and accumulation stay in f32).
    assert jnp.allclose(out, out_ref, atol=2e-2, rtol=2e-2)
    assert jnp.allclose(attn, attn_ref, atol=2e-2, rtol=2e-2)
    # Masked key columns must get exactly zero attention (exp underflows to 0).
    assert jnp.all(jnp.where(mask_list[:, None, None, :], attn, 0.0) == 0.0)

    print("KERNEL_OK")
</pallas_src>

<mosaic_0001>
module attributes {stable_mosaic.version = 11 : i64} {
  func.func @_attention_kernel(%arg0: i32, %arg1: memref<2x8x32xf32, #tpu.memory_space<vmem>>, %arg2: memref<2x1x8xf32, #tpu.memory_space<vmem>>, %arg3: memref<1x32xf32, #tpu.memory_space<vmem>>, %arg4: memref<1x32xf32, #tpu.memory_space<vmem>>, %arg5: memref<32x192xbf16, #tpu.memory_space<vmem>>, %arg6: memref<64x32xbf16, #tpu.memory_space<vmem>>, %arg7: memref<2x8x32xf32, #tpu.memory_space<vmem>>, %arg8: memref<2x4x8x8xf32, #tpu.memory_space<vmem>>) attributes {dimension_semantics = [#tpu.dimension_semantics<parallel>], iteration_bounds = array<i64: 1>, scalar_prefetch = 0 : i64, scratch_operands = 0 : i64, tpu.core_type = #tpu.core_type<tc>, window_params = [{transform_indices = @transform_0, window_bounds = array<i64: 2, 8, 32>}, {transform_indices = @transform_1, window_bounds = array<i64: 2, 1, 8>}, {pipeline_mode = #tpu.pipeline_mode<synchronous>, transform_indices = @transform_2, window_bounds = array<i64: 1, 32>}, {pipeline_mode = #tpu.pipeline_mode<synchronous>, transform_indices = @transform_3, window_bounds = array<i64: 1, 32>}, {pipeline_mode = #tpu.pipeline_mode<synchronous>, transform_indices = @transform_4, window_bounds = array<i64: 32, 192>}, {pipeline_mode = #tpu.pipeline_mode<synchronous>, transform_indices = @transform_5, window_bounds = array<i64: 64, 32>}, {transform_indices = @transform_6, window_bounds = array<i64: 2, 8, 32>}, {transform_indices = @transform_7, window_bounds = array<i64: 2, 4, 8, 8>}]} {
    %c0 = arith.constant 0 : index
    %c0_0 = arith.constant 0 : index
    %c0_1 = arith.constant 0 : index
    %0 = vector.load %arg1[%c0, %c0_0, %c0_1] : memref<2x8x32xf32, #tpu.memory_space<vmem>>, vector<2x8x32xf32>
    %1 = vector.shape_cast %0 : vector<2x8x32xf32> to vector<16x32xf32>
    %cst = arith.constant dense<0.000000e+00> : vector<16xf32>
    %2 = vector.multi_reduction <add>, %1, %cst [1] : vector<16x32xf32> to vector<16xf32>
    %3 = vector.shape_cast %2 : vector<16xf32> to vector<16x1xf32>
    %cst_2 = arith.constant 3.200000e+01 : f32
    %4 = vector.broadcast %cst_2 : f32 to vector<16x1xf32>
    %5 = arith.divf %3, %4 : vector<16x1xf32>
    %6 = vector.broadcast %5 : vector<16x1xf32> to vector<16x32xf32>
    %7 = arith.subf %1, %6 : vector<16x32xf32>
    %8 = arith.mulf %7, %7 : vector<16x32xf32>
    %cst_3 = arith.constant dense<0.000000e+00> : vector<16xf32>
    %9 = vector.multi_reduction <add>, %8, %cst_3 [1] : vector<16x32xf32> to vector<16xf32>
    %10 = vector.shape_cast %9 : vector<16xf32> to vector<16x1xf32>
    %cst_4 = arith.constant 3.200000e+01 : f32
    %11 = vector.broadcast %cst_4 : f32 to vector<16x1xf32>
    %12 = arith.divf %10, %11 : vector<16x1xf32>
    %13 = vector.broadcast %5 : vector<16x1xf32> to vector<16x32xf32>
    %14 = arith.subf %1, %13 : vector<16x32xf32>
    %cst_5 = arith.constant 9.99999974E-6 : f32
    %15 = vector.broadcast %cst_5 : f32 to vector<16x1xf32>
    %16 = arith.addf %12, %15 : vector<16x1xf32>
    %17 = math.rsqrt %16 : vector<16x1xf32>
    %18 = vector.broadcast %17 : vector<16x1xf32> to vector<16x32xf32>
    %19 = arith.mulf %14, %18 : vector<16x32xf32>
    %c0_6 = arith.constant 0 : index
    %c0_7 = arith.constant 0 : index
    %20 = vector.load %arg3[%c0_6, %c0_7] : memref<1x32xf32, #tpu.memory_space<vmem>>, vector<1x32xf32>
    %21 = vector.broadcast %20 : vector<1x32xf32> to vector<16x32xf32>
    %22 = arith.mulf %19, %21 : vector<16x32xf32>
    %c0_8 = arith.constant 0 : index
    %c0_9 = arith.constant 0 : index
    %23 = vector.load %arg4[%c0_8, %c0_9] : memref<1x32xf32, #tpu.memory_space<vmem>>, vector<1x32xf32>
    %24 = vector.broadcast %23 : vector<1x32xf32> to vector<16x32xf32>
    %25 = arith.addf %22, %24 : vector<16x32xf32>
    %26 = arith.truncf %25 : vector<16x32xf32> to vector<16x32xbf16>
    %c0_10 = arith.constant 0 : index
    %c0_11 = arith.constant 0 : index
    %27 = vector.load %arg5[%c0_10, %c0_11] : memref<32x192xbf16, #tpu.memory_space<vmem>>, vector<32x192xbf16>
    %cst_12 = arith.constant dense<0.000000e+00> : vector<16x192xf32>
    %28 = tpu.matmul %26, %27, %cst_12 {dimension_numbers = #tpu.dot_dimension_numbers<[1], [0], [0], [1], [0, 0, 1, 1], [], []>} : vector<16x32xbf16>, vector<32x192xbf16>, vector<16x192xf32> -> vector<16x192xf32>
    %29 = vector.shape_cast %28 : vector<16x192xf32> to vector<2x8x192xf32>
    %30 = arith.truncf %29 : vector<2x8x192xf32> to vector<2x8x192xbf16>
    %c0_13 = arith.constant 0 : index
    %c0_14 = arith.constant 0 : index
    %c0_15 = arith.constant 0 : index
    %31 = vector.load %arg2[%c0_13, %c0_14, %c0_15] : memref<2x1x8xf32, #tpu.memory_space<vmem>>, vector<2x1x8xf32>
    %cst_16 = arith.constant 0.000000e+00 : f32
    %32 = vector.broadcast %cst_16 : f32 to vector<2x1x8xf32>
    %33 = arith.cmpf ogt, %31, %32 : vector<2x1x8xf32>
    %cst_17 = arith.constant -1.000000e+30 : f32
    %cst_18 = arith.constant 0.000000e+00 : f32
    %34 = vector.broadcast %cst_17 : f32 to vector<2x1x8xf32>
    %35 = vector.broadcast %cst_18 : f32 to vector<2x1x8xf32>
    %36 = arith.select %33, %34, %35 : vector<2x1x8xi1>, vector<2x1x8xf32>
    %37 = vector.extract_strided_slice %30 {offsets = [0, 0, 0], sizes = [2, 8, 16], strides = [1, 1, 1]} : vector<2x8x192xbf16> to vector<2x8x16xbf16>
    %38 = vector.extract_strided_slice %30 {offsets = [0, 0, 64], sizes = [2, 8, 16], strides = [1, 1, 1]} : vector<2x8x192xbf16> to vector<2x8x16xbf16>
    %39 = vector.extract_strided_slice %30 {offsets = [0, 0, 128], sizes = [2, 8, 16], strides = [1, 1, 1]} : vector<2x8x192xbf16> to vector<2x8x16xbf16>
    "tpu.trace_start"() <{level = 10 : i32, message = "bid,bjd->bij"}> : () -> ()
    %cst_19 = arith.constant dense<0.000000e+00> : vector<2x8x8xf32>
    %40 = tpu.matmul %37, %38, %cst_19 {dimension_numbers = #tpu.dot_dimension_numbers<[2], [2], [1], [1], [0, 0, 0, 1, 1, 1], [0], [0]>} : vector<2x8x16xbf16>, vector<2x8x16xbf16>, vector<2x8x8xf32> -> vector<2x8x8xf32>
    "tpu.trace_stop"() : () -> ()
    %41 = vector.broadcast %36 : vector<2x1x8xf32> to vector<2x8x8xf32>
    %42 = arith.addf %40, %41 : vector<2x8x8xf32>
    %cst_20 = arith.constant dense<0xFF800000> : vector<2x8xf32>
    %43 = vector.multi_reduction <maximumf>, %42, %cst_20 [2] : vector<2x8x8xf32> to vector<2x8xf32>
    %44 = vector.shape_cast %43 : vector<2x8xf32> to vector<2x8x1xf32>
    %45 = vector.broadcast %44 : vector<2x8x1xf32> to vector<2x8x8xf32>
    %46 = arith.subf %42, %45 : vector<2x8x8xf32>
    %47 = math.exp %46 : vector<2x8x8xf32>
    %cst_21 = arith.constant dense<0.000000e+00> : vector<2x8xf32>
    %48 = vector.multi_reduction <add>, %47, %cst_21 [2] : vector<2x8x8xf32> to vector<2x8xf32>
    %49 = vector.shape_cast %48 : vector<2x8xf32> to vector<2x8x1xf32>
    %50 = tpu.reciprocal %49 {approx = true} : vector<2x8x1xf32> -> vector<2x8x1xf32>
    %51 = vector.broadcast %50 : vector<2x8x1xf32> to vector<2x8x8xf32>
    %52 = arith.mulf %47, %51 : vector<2x8x8xf32>
    %c0_22 = arith.constant 0 : index
    %c0_23 = arith.constant 0 : index
    %c0_24 = arith.constant 0 : index
    %c0_25 = arith.constant 0 : index
    %53 = vector.load %arg8[%c0_22, %c0_23, %c0_24, %c0_25] : memref<2x4x8x8xf32, #tpu.memory_space<vmem>>, vector<2x1x8x8xf32>
    %54 = vector.shape_cast %53 : vector<2x1x8x8xf32> to vector<2x8x8xf32>
    %55 = vector.shape_cast %52 : vector<2x8x8xf32> to vector<2x1x8x8xf32>
    tpu.vector_store %arg8[%c0_22, %c0_23, %c0_24, %c0_25], %55 {strides = array<i32>} : memref<2x4x8x8xf32, #tpu.memory_space<vmem>>, vector<2x1x8x8xf32>,
    %56 = arith.truncf %52 : vector<2x8x8xf32> to vector<2x8x8xbf16>
    "tpu.trace_start"() <{level = 10 : i32, message = "bij,bjd->bid"}> : () -> ()
    %cst_26 = arith.constant dense<0.000000e+00> : vector<2x8x16xf32>
    %57 = tpu.matmul %56, %39, %cst_26 {dimension_numbers = #tpu.dot_dimension_numbers<[2], [1], [1], [2], [0, 0, 0, 1, 1, 2], [0], [0]>} : vector<2x8x8xbf16>, vector<2x8x16xbf16>, vector<2x8x16xf32> -> vector<2x8x16xf32>
    "tpu.trace_stop"() : () -> ()
    %58 = vector.extract_strided_slice %30 {offsets = [0, 0, 16], sizes = [2, 8, 16], strides = [1, 1, 1]} : vector<2x8x192xbf16> to vector<2x8x16xbf16>
    %59 = vector.extract_strided_slice %30 {offsets = [0, 0, 80], sizes = [2, 8, 16], strides = [1, 1, 1]} : vector<2x8x192xbf16> to vector<2x8x16xbf16>
    %60 = vector.extract_strided_slice %30 {offsets = [0, 0, 144], sizes = [2, 8, 16], strides = [1, 1, 1]} : vector<2x8x192xbf16> to vector<2x8x16xbf16>
    "tpu.trace_start"() <{level = 10 : i32, message = "bid,bjd->bij"}> : () -> ()
    %cst_27 = arith.constant dense<0.000000e+00> : vector<2x8x8xf32>
    %61 = tpu.matmul %58, %59, %cst_27 {dimension_numbers = #tpu.dot_dimension_numbers<[2], [2], [1], [1], [0, 0, 0, 1, 1, 1], [0], [0]>} : vector<2x8x16xbf16>, vector<2x8x16xbf16>, vector<2x8x8xf32> -> vector<2x8x8xf32>
    "tpu.trace_stop"() : () -> ()
    %62 = vector.broadcast %36 : vector<2x1x8xf32> to vector<2x8x8xf32>
    %63 = arith.addf %61, %62 : vector<2x8x8xf32>
    %cst_28 = arith.constant dense<0xFF800000> : vector<2x8xf32>
    %64 = vector.multi_reduction <maximumf>, %63, %cst_28 [2] : vector<2x8x8xf32> to vector<2x8xf32>
    %65 = vector.shape_cast %64 : vector<2x8xf32> to vector<2x8x1xf32>
    %66 = vector.broadcast %65 : vector<2x8x1xf32> to vector<2x8x8xf32>
    %67 = arith.subf %63, %66 : vector<2x8x8xf32>
    %68 = math.exp %67 : vector<2x8x8xf32>
    %cst_29 = arith.constant dense<0.000000e+00> : vector<2x8xf32>
    %69 = vector.multi_reduction <add>, %68, %cst_29 [2] : vector<2x8x8xf32> to vector<2x8xf32>
    %70 = vector.shape_cast %69 : vector<2x8xf32> to vector<2x8x1xf32>
    %71 = tpu.reciprocal %70 {approx = true} : vector<2x8x1xf32> -> vector<2x8x1xf32>
    %72 = vector.broadcast %71 : vector<2x8x1xf32> to vector<2x8x8xf32>
    %73 = arith.mulf %68, %72 : vector<2x8x8xf32>
    %c0_30 = arith.constant 0 : index
    %c1 = arith.constant 1 : index
    %c0_31 = arith.constant 0 : index
    %c0_32 = arith.constant 0 : index
    %74 = vector.load %arg8[%c0_30, %c1, %c0_31, %c0_32] : memref<2x4x8x8xf32, #tpu.memory_space<vmem>>, vector<2x1x8x8xf32>
    %75 = vector.shape_cast %74 : vector<2x1x8x8xf32> to vector<2x8x8xf32>
    %76 = vector.shape_cast %73 : vector<2x8x8xf32> to vector<2x1x8x8xf32>
    tpu.vector_store %arg8[%c0_30, %c1, %c0_31, %c0_32], %76 {strides = array<i32>} : memref<2x4x8x8xf32, #tpu.memory_space<vmem>>, vector<2x1x8x8xf32>,
    %77 = arith.truncf %73 : vector<2x8x8xf32> to vector<2x8x8xbf16>
    "tpu.trace_start"() <{level = 10 : i32, message = "bij,bjd->bid"}> : () -> ()
    %cst_33 = arith.constant dense<0.000000e+00> : vector<2x8x16xf32>
    %78 = tpu.matmul %77, %60, %cst_33 {dimension_numbers = #tpu.dot_dimension_numbers<[2], [1], [1], [2], [0, 0, 0, 1, 1, 2], [0], [0]>} : vector<2x8x8xbf16>, vector<2x8x16xbf16>, vector<2x8x16xf32> -> vector<2x8x16xf32>
    "tpu.trace_stop"() : () -> ()
    %79 = vector.extract_strided_slice %30 {offsets = [0, 0, 32], sizes = [2, 8, 16], strides = [1, 1, 1]} : vector<2x8x192xbf16> to vector<2x8x16xbf16>
    %80 = vector.extract_strided_slice %30 {offsets = [0, 0, 96], sizes = [2, 8, 16], strides = [1, 1, 1]} : vector<2x8x192xbf16> to vector<2x8x16xbf16>
    %81 = vector.extract_strided_slice %30 {offsets = [0, 0, 160], sizes = [2, 8, 16], strides = [1, 1, 1]} : vector<2x8x192xbf16> to vector<2x8x16xbf16>
    "tpu.trace_start"() <{level = 10 : i32, message = "bid,bjd->bij"}> : () -> ()
    %cst_34 = arith.constant dense<0.000000e+00> : vector<2x8x8xf32>
    %82 = tpu.matmul %79, %80, %cst_34 {dimension_numbers = #tpu.dot_dimension_numbers<[2], [2], [1], [1], [0, 0, 0, 1, 1, 1], [0], [0]>} : vector<2x8x16xbf16>, vector<2x8x16xbf16>, vector<2x8x8xf32> -> vector<2x8x8xf32>
    "tpu.trace_stop"() : () -> ()
    %83 = vector.broadcast %36 : vector<2x1x8xf32> to vector<2x8x8xf32>
    %84 = arith.addf %82, %83 : vector<2x8x8xf32>
    %cst_35 = arith.constant dense<0xFF800000> : vector<2x8xf32>
    %85 = vector.multi_reduction <maximumf>, %84, %cst_35 [2] : vector<2x8x8xf32> to vector<2x8xf32>
    %86 = vector.shape_cast %85 : vector<2x8xf32> to vector<2x8x1xf32>
    %87 = vector.broadcast %86 : vector<2x8x1xf32> to vector<2x8x8xf32>
    %88 = arith.subf %84, %87 : vector<2x8x8xf32>
    %89 = math.exp %88 : vector<2x8x8xf32>
    %cst_36 = arith.constant dense<0.000000e+00> : vector<2x8xf32>
    %90 = vector.multi_reduction <add>, %89, %cst_36 [2] : vector<2x8x8xf32> to vector<2x8xf32>
    %91 = vector.shape_cast %90 : vector<2x8xf32> to vector<2x8x1xf32>
    %92 = tpu.reciprocal %91 {approx = true} : vector<2x8x1xf32> -> vector<2x8x1xf32>
    %93 = vector.broadcast %92 : vector<2x8x1xf32> to vector<2x8x8xf32>
    %94 = arith.mulf %89, %93 : vector<2x8x8xf32>
    %c0_37 = arith.constant 0 : index
    %c2 = arith.constant 2 : index
    %c0_38 = arith.constant 0 : index
    %c0_39 = arith.constant 0 : index
    %95 = vector.load %arg8[%c0_37, %c2, %c0_38, %c0_39] : memref<2x4x8x8xf32, #tpu.memory_space<vmem>>, vector<2x1x8x8xf32>
    %96 = vector.shape_cast %95 : vector<2x1x8x8xf32> to vector<2x8x8xf32>
    %97 = vector.shape_cast %94 : vector<2x8x8xf32> to vector<2x1x8x8xf32>
    tpu.vector_store %arg8[%c0_37, %c2, %c0_38, %c0_39], %97 {strides = array<i32>} : memref<2x4x8x8xf32, #tpu.memory_space<vmem>>, vector<2x1x8x8xf32>,
    %98 = arith.truncf %94 : vector<2x8x8xf32> to vector<2x8x8xbf16>
    "tpu.trace_start"() <{level = 10 : i32, message = "bij,bjd->bid"}> : () -> ()
    %cst_40 = arith.constant dense<0.000000e+00> : vector<2x8x16xf32>
    %99 = tpu.matmul %98, %81, %cst_40 {dimension_numbers = #tpu.dot_dimension_numbers<[2], [1], [1], [2], [0, 0, 0, 1, 1, 2], [0], [0]>} : vector<2x8x8xbf16>, vector<2x8x16xbf16>, vector<2x8x16xf32> -> vector<2x8x16xf32>
    "tpu.trace_stop"() : () -> ()
    %100 = vector.extract_strided_slice %30 {offsets = [0, 0, 48], sizes = [2, 8, 16], strides = [1, 1, 1]} : vector<2x8x192xbf16> to vector<2x8x16xbf16>
    %101 = vector.extract_strided_slice %30 {offsets = [0, 0, 112], sizes = [2, 8, 16], strides = [1, 1, 1]} : vector<2x8x192xbf16> to vector<2x8x16xbf16>
    %102 = vector.extract_strided_slice %30 {offsets = [0, 0, 176], sizes = [2, 8, 16], strides = [1, 1, 1]} : vector<2x8x192xbf16> to vector<2x8x16xbf16>
    "tpu.trace_start"() <{level = 10 : i32, message = "bid,bjd->bij"}> : () -> ()
    %cst_41 = arith.constant dense<0.000000e+00> : vector<2x8x8xf32>
    %103 = tpu.matmul %100, %101, %cst_41 {dimension_numbers = #tpu.dot_dimension_numbers<[2], [2], [1], [1], [0, 0, 0, 1, 1, 1], [0], [0]>} : vector<2x8x16xbf16>, vector<2x8x16xbf16>, vector<2x8x8xf32> -> vector<2x8x8xf32>
    "tpu.trace_stop"() : () -> ()
    %104 = vector.broadcast %36 : vector<2x1x8xf32> to vector<2x8x8xf32>
    %105 = arith.addf %103, %104 : vector<2x8x8xf32>
    %cst_42 = arith.constant dense<0xFF800000> : vector<2x8xf32>
    %106 = vector.multi_reduction <maximumf>, %105, %cst_42 [2] : vector<2x8x8xf32> to vector<2x8xf32>
    %107 = vector.shape_cast %106 : vector<2x8xf32> to vector<2x8x1xf32>
    %108 = vector.broadcast %107 : vector<2x8x1xf32> to vector<2x8x8xf32>
    %109 = arith.subf %105, %108 : vector<2x8x8xf32>
    %110 = math.exp %109 : vector<2x8x8xf32>
    %cst_43 = arith.constant dense<0.000000e+00> : vector<2x8xf32>
    %111 = vector.multi_reduction <add>, %110, %cst_43 [2] : vector<2x8x8xf32> to vector<2x8xf32>
    %112 = vector.shape_cast %111 : vector<2x8xf32> to vector<2x8x1xf32>
    %113 = tpu.reciprocal %112 {approx = true} : vector<2x8x1xf32> -> vector<2x8x1xf32>
    %114 = vector.broadcast %113 : vector<2x8x1xf32> to vector<2x8x8xf32>
    %115 = arith.mulf %110, %114 : vector<2x8x8xf32>
    %c0_44 = arith.constant 0 : index
    %c3 = arith.constant 3 : index
    %c0_45 = arith.constant 0 : index
    %c0_46 = arith.constant 0 : index
    %116 = vector.load %arg8[%c0_44, %c3, %c0_45, %c0_46] : memref<2x4x8x8xf32, #tpu.memory_space<vmem>>, vector<2x1x8x8xf32>
    %117 = vector.shape_cast %116 : vector<2x1x8x8xf32> to vector<2x8x8xf32>
    %118 = vector.shape_cast %115 : vector<2x8x8xf32> to vector<2x1x8x8xf32>
    tpu.vector_store %arg8[%c0_44, %c3, %c0_45, %c0_46], %118 {strides = array<i32>} : memref<2x4x8x8xf32, #tpu.memory_space<vmem>>, vector<2x1x8x8xf32>,
    %119 = arith.truncf %115 : vector<2x8x8xf32> to vector<2x8x8xbf16>
    "tpu.trace_start"() <{level = 10 : i32, message = "bij,bjd->bid"}> : () -> ()
    %cst_47 = arith.constant dense<0.000000e+00> : vector<2x8x16xf32>
    %120 = tpu.matmul %119, %102, %cst_47 {dimension_numbers = #tpu.dot_dimension_numbers<[2], [1], [1], [2], [0, 0, 0, 1, 1, 2], [0], [0]>} : vector<2x8x8xbf16>, vector<2x8x16xbf16>, vector<2x8x16xf32> -> vector<2x8x16xf32>
    "tpu.trace_stop"() : () -> ()
    %121 = tpu.concatenate %57, %78, %99, %120 in 2 : vector<2x8x16xf32>, vector<2x8x16xf32>, vector<2x8x16xf32>, vector<2x8x16xf32> -> vector<2x8x64xf32>
    %122 = vector.shape_cast %121 : vector<2x8x64xf32> to vector<16x64xf32>
    %123 = arith.truncf %122 : vector<16x64xf32> to vector<16x64xbf16>
    %c0_48 = arith.constant 0 : index
    %c0_49 = arith.constant 0 : index
    %124 = vector.load %arg6[%c0_48, %c0_49] : memref<64x32xbf16, #tpu.memory_space<vmem>>, vector<64x32xbf16>
    %cst_50 = arith.constant dense<0.000000e+00> : vector<16x32xf32>
    %125 = tpu.matmul %123, %124, %cst_50 {dimension_numbers = #tpu.dot_dimension_numbers<[1], [0], [0], [1], [0, 0, 1, 1], [], []>} : vector<16x64xbf16>, vector<64x32xbf16>, vector<16x32xf32> -> vector<16x32xf32>
    %126 = vector.shape_cast %125 : vector<16x32xf32> to vector<2x8x32xf32>
    %c0_51 = arith.constant 0 : index
    %c0_52 = arith.constant 0 : index
    %c0_53 = arith.constant 0 : index
    %127 = vector.load %arg7[%c0_51, %c0_52, %c0_53] : memref<2x8x32xf32, #tpu.memory_space<vmem>>, vector<2x8x32xf32>
    tpu.vector_store %arg7[%c0_51, %c0_52, %c0_53], %126 {strides = array<i32>} : memref<2x8x32xf32, #tpu.memory_space<vmem>>, vector<2x8x32xf32>,
    return
  }
  func.func @transform_0(%arg0: i32) -> (i32, i32, i32) {
    %c0_i32 = arith.constant 0 : i32
    %c0_i32_0 = arith.constant 0 : i32
    %c0_i32_1 = arith.constant 0 : i32
    return %arg0, %c0_i32, %c0_i32_0 : i32, i32, i32
  }
  func.func @transform_1(%arg0: i32) -> (i32, i32, i32) {
    %c0_i32 = arith.constant 0 : i32
    %c0_i32_0 = arith.constant 0 : i32
    %c0_i32_1 = arith.constant 0 : i32
    return %arg0, %c0_i32, %c0_i32_0 : i32, i32, i32
  }
  func.func @transform_2(%arg0: i32) -> (i32, i32) {
    %c0_i32 = arith.constant 0 : i32
    %c0_i32_0 = arith.constant 0 : i32
    %c0_i32_1 = arith.constant 0 : i32
    return %c0_i32, %c0_i32_0 : i32, i32
  }
  func.func @transform_3(%arg0: i32) -> (i32, i32) {
    %c0_i32 = arith.constant 0 : i32
    %c0_i32_0 = arith.constant 0 : i32
    %c0_i32_1 = arith.constant 0 : i32
    return %c0_i32, %c0_i32_0 : i32, i32
  }
  func.func @transform_4(%arg0: i32) -> (i32, i32) {
    %c0_i32 = arith.constant 0 : i32
    %c0_i32_0 = arith.constant 0 : i32
    %c0_i32_1 = arith.constant 0 : i32
    return %c0_i32, %c0_i32_0 : i32, i32
  }
  func.func @transform_5(%arg0: i32) -> (i32, i32) {
    %c0_i32 = arith.constant 0 : i32
    %c0_i32_0 = arith.constant 0 : i32
    %c0_i32_1 = arith.constant 0 : i32
    return %c0_i32, %c0_i32_0 : i32, i32
  }
  func.func @transform_6(%arg0: i32) -> (i32, i32, i32) {
    %c0_i32 = arith.constant 0 : i32
    %c0_i32_0 = arith.constant 0 : i32
    %c0_i32_1 = arith.constant 0 : i32
    return %arg0, %c0_i32, %c0_i32_0 : i32, i32, i32
  }
  func.func @transform_7(%arg0: i32) -> (i32, i32, i32, i32) {
    %c0_i32 = arith.constant 0 : i32
    %c0_i32_0 = arith.constant 0 : i32
    %c0_i32_1 = arith.constant 0 : i32
    %c0_i32_2 = arith.constant 0 : i32
    return %arg0, %c0_i32, %c0_i32_0, %c0_i32_1 : i32, i32, i32, i32
  }
}

</mosaic_0001>

<bundles_post_ra>
// kernel: tpu_custom_call.1
= control target key start
LH: loop header
LB: loop body
LE: loop exit
PB: predicated region body
PF: predicated region fallthrough
CT: control target
= control target key end

     0   :  { %13 = vsyncpa [#allocation3], 0  ;;  %vm30_vm0 = vcmask 261120   ;;  %s1799_s0 = inlined_call_operand.vmem [shape: f32[2,8,32], index: 0, kind: input, shape index: {}]   ;;  %s1800_s1 = inlined_call_operand.vmem [shape: f32[2,1,8], index: 1, kind: input, shape index: {}]   ;;  %s1801_s2 = inlined_call_operand.vmem [shape: f32[1,32], index: 2, kind: input, shape index: {}]   ;;  %s1802_s3 = inlined_call_operand.vmem [shape: f32[1,32], index: 3, kind: input, shape index: {}]   ;;  %s1803_s4 = inlined_call_operand.vmem [shape: bf16[32,192], index: 4, kind: input, shape index: {}]   ;;  %s1804_s5 = inlined_call_operand.vmem [shape: bf16[64,32], index: 5, kind: input, shape index: {}]   ;;  %s1805_s6 = inlined_call_operand.hbm [shape: f32[2,8,32], index: 6, kind: output, shape index: {0}]   ;;  %s1806_s7 = inlined_call_operand.hbm [shape: f32[2,4,8,8], index: 7, kind: output, shape index: {1}]  }
   0x1   :  { %v28_v0 = vld [vmem:[%s1799_s0] sm:$0xff]  ;;  %v29_v1 = vld [vmem:[%s1799_s0 + $0x8] sm:$0xff] }
   0x2   :  { %v31_v2 = vsel %vm30_vm0, %v28_v0, 0.0  ;;  %v34_v3 = vsel %vm30_vm0, %v29_v1, 0.0 }
   0x3   :  { %32 = vadd.xlane.f32.xlu0 %v31_v2 }
   0x4   :  { %14 = vsyncpa [#allocation5], 0  ;;  %v1404_v14 = vld [vmem:[%s1803_s4 + $0x14] ss:$8 sps:$4 sm:$0xff]   ;;  %v1406_v15 = vld [vmem:[%s1803_s4 + $0x10] ss:$8 sps:$4 sm:$0xff]   ;;  %v159_v51 = vlaneseq }
   0x5   :  { %v1407_v16 = vld [vmem:[%s1803_s4 + $0x4] ss:$8 sps:$4 sm:$0xff]   ;;  %116 = vmatprep.subr.bf16.mxu0 %v1404_v14  ;;  %v1494_v17 = vmov 0   ;;  %v1409_v18 = vld [vmem:[%s1803_s4] ss:$8 sps:$4 sm:$0xff]   ;;  %v1495_v36 = vmov 0.0  }
   0x6   :  { %136 = vmatprep.mubr.bf16.mxu0 %v1494_v17  ;;  %117 = vmatpush1.bf16.msra.mxu0 %v1406_v15  ;;  %v1202_v27 = vld [vmem:[%s1801_s2] ss:$0 sm:$0xff]  ;;  %vm1496_vm1 = vmmov 0   ;;  %s1497_s2 = smov 64   ;;  %vm172_vm2 = vcmask 130048   ;;  %vm298_vm3 = vcmask 1043456  }
   0x7   :  { %35 = vadd.xlane.f32.xlu0 %v34_v3  ;;  %118 = vmatprep.subr.bf16.mxu0 %v1407_v16  ;;  %v1203_v31 = vld [vmem:[%s1802_s3] ss:$0 sm:$0xff]  ;;  %v160_v53 = vshrl.u32 %v159_v51, 7  ;;  %v152_v54 = vld [vmem:[%s1800_s1 + $0x1] sm:$0x1]  ;;  %vm268_vm6 = vcmask 64512  }
   0x8   :  { %1267 = vmatprep.subr.bf16.mxu1 %v1495_v36  ;;  %1269 = vmatprep.mubr.msk.bf16.mxu1 %vm1496_vm1, %v1495_v36  ;;  %v151_v52 = vld [vmem:[%s1800_s1] sm:$0x1]  ;;  %vm154_vm5 = vcmp.gt.f32.partialorder %v152_v54, 0.0  ;;  %s1498_s1 = smov 48   ;;  %s1499_s18 = smov 112   ;;  %vm1087_vm7 = vcmask 392192  }
   0x9   :  { %vm153_vm4 = vcmp.gt.f32.partialorder %v151_v52, 0.0  ;;  %v161_v55 = vsub.s32 0, %v160_v53  ;;  %v156_v58 = vsel %vm154_vm5, -1e+30, %v1495_v36  ;;  %s1500_s19 = smov 32   ;;  %s1501_s20 = smov 96  }
   0xa   :  { %119 = vmatpush1.bf16.msra.mxu0 %v1409_v18  ;;  %v155_v56 = vsel %vm153_vm4, -1e+30, %v1495_v36  ;;  %s1502_s21 = smov 16   ;;  %s1503_s22 = smov 80   ;;  %vm1123_vm8 = vcmask 523264  }
   0xb   :  { %1273 = vmatprep.subr.bf16.mxu0 %v1495_v36  ;;  %v1618_v57 = vrot.slane %v155_v56, %v161_v55  ;;  %v1622_v61 = vrot.slane %v156_v58, %v161_v55 }
  0x8c   :  { %v33_v4 = vpop.xlane.xlu0 %32 }
  0x8d   :  { %v38_v5 = vmul.f32 0.03125, %v33_v4 }
  0x8f   :  { %v40_v6 = vsub.f32 %v28_v0, %v38_v5 }
  0x90   :  { %v36_v7 = vpop.xlane.xlu0 %35 }
  0x91   :  { %v39_v8 = vmul.f32 0.03125, %v36_v7  ;;  %v42_v9 = vmul.f32 %v40_v6, %v40_v6 }
  0x93   :  { %v41_v10 = vsub.f32 %v29_v1, %v39_v8  ;;  %v44_v11 = vsel %vm30_vm0, %v42_v9, 0.0 }
  0x94   :  { %45 = vadd.xlane.f32.xlu1 %v44_v11 }
  0x95   :  { %v43_v12 = vmul.f32 %v41_v10, %v41_v10 }
  0x97   :  { %v47_v13 = vsel %vm30_vm0, %v43_v12, 0.0 }
  0x98   :  { %48 = vadd.xlane.f32.xlu1 %v47_v13 }
 0x11d   :  { %v46_v19 = vpop.xlane.xlu1 %45 }
 0x11e   :  { %v50_v20 = vmul.f32 0.03125, %v46_v19 }
 0x120   :  { %v52_v21 = vadd.f32 1e-05, %v50_v20 }
 0x121   :  { %v49_v22 = vpop.xlane.xlu1 %48 }
 0x122   :  { %1414 = vrsqrt.f32 %v52_v21  ;;  %v51_v23 = vmul.f32 0.03125, %v49_v22 }
 0x124   :  { %v53_v24 = vadd.f32 1e-05, %v51_v23 }
 0x126   :  { %1416 = vrsqrt.f32 %v53_v24 }
 0x12f   :  { %v1415_v25 = vpop.eup %1414 }
 0x130   :  { %v56_v26 = vmul.f32 %v1415_v25, %v40_v6 }
 0x132   :  { %v65_v30 = vmul.f32 %v1202_v27, %v56_v26 }
 0x133   :  { %v1417_v28 = vpop.eup %1416 }
 0x134   :  { %v57_v29 = vmul.f32 %v1417_v28, %v41_v10  ;;  %v74_v33 = vadd.f32 %v1203_v31, %v65_v30 }
 0x136   :  { %v66_v32 = vmul.f32 %v1202_v27, %v57_v29 }
 0x138   :  { %v75_v34 = vadd.f32 %v1203_v31, %v66_v32 }
 0x13a   :  { %v76_v35 = vpack.c.bf16 %v75_v34, %v74_v33 }
 0x13c   :  { %1208 = vmatmul.mubr.msk.bf16.vlgmr.msra.gmra.mxu0 %vm30_vm0, %v76_v35 }
 0x13d   :  { %1275 = vmatprep.mubr.msk.bf16.mxu0 %vm1496_vm1, %v1495_v36 }
 0x1fc   :  { %v138_v37 = vpop.f32.mrf.mxu0 }
 0x1fd   :  { %v1583_v38 = vpack.c.bf16 %v138_v37, %v138_v37 }
 0x1fe   :  { %v140_v39 = vpop.f32.mrf.mxu0 }
 0x1ff   :  { %170 = vrot.lane.b32.xlu0 %v1583_v38, %s1497_s2  ;;  %v1591_v45 = vpack.c.bf16 %v140_v39, %v140_v39 }
 0x200   :  { %v142_v40 = vpop.f32.mrf.mxu0 }
 0x201   :  { %v1586_v41 = vpack.c.bf16 %v142_v40, %v142_v40  ;;  %v300_v49 = vsel %vm298_vm3, %v1591_v45, 0 }
 0x202   :  { %v144_v47 = vpop.f32.mrf.mxu0 }
 0x203   :  { %220 = vrot.lane.b32.xlu1 %v1586_v41, %s1497_s2  ;;  %v1595_v48 = vpack.c.bf16 %v144_v47, %v144_v47 }
 0x205   :  { %v346_v50 = vsel %vm298_vm3, %v1595_v48, 0 }
 0x271   :  { %v171_v42 = vpop.permute.xlu0 %170 }
 0x272   :  { %v177_v43 = vsel %vm172_vm2, %v171_v42, 0 }
 0x273   :  { %1268 = vmatpush3.bf16.xpose.msra.mxu1 %v177_v43 }
 0x274   :  { %1279 = vmatprep.subr.bf16.mxu1 %v1495_v36 }
 0x275   :  { %v221_v44 = vpop.permute.xlu1 %220 }
 0x276   :  { %v226_v46 = vsel %vm172_vm2, %v221_v44, 0 }
 0x277   :  { %1274 = vmatpush3.bf16.xpose.msra.mxu0 %v226_v46 }
 0x278   :  { %1285 = vmatprep.subr.bf16.mxu0 %v1495_v36 }
 0x27a   :  { %1270 = vmatmul.mubr.msk.bf16.vlgmr.msra.gmra.mxu1 %vm172_vm2, %v1583_v38 }
 0x27b   :  { %1280 = vmatpush3.bf16.msra.mxu1 %v300_v49  ;;  %1281 = vmatprep.mubr.msk.bf16.mxu1 %vm1496_vm1, %v1495_v36 }
 0x27c   :  { %1291 = vmatprep.subr.bf16.mxu1 %v1495_v36 }
 0x27e   :  { %1276 = vmatmul.mubr.msk.bf16.vlgmr.msra.gmra.mxu0 %vm172_vm2, %v1586_v41 }
 0x27f   :  { %1286 = vmatpush3.bf16.msra.mxu0 %v346_v50  ;;  %1287 = vmatprep.mubr.msk.bf16.mxu0 %vm1496_vm1, %v1495_v36 }
 0x280   :  { %1297 = vmatprep.subr.bf16.mxu0 %v1495_v36 }
 0x33a   :  { %v213_v59 = vpop.f32.mrf.mxu1 }
 0x33b   :  { %v214_v60 = vadd.f32 %v213_v59, %v1618_v57 }
 0x33c   :  { %v1271_v62 = vpop.f32.mrf.mxu1 }
 0x33d   :  { %v269_v63 = vsel %vm268_vm6, %v214_v60, -inf }
 0x33e   :  { %v216_v0 = vpop.f32.mrf.mxu1  ;;  %270 = vmax.xlane.f32.xlu1 %v269_v63  ;;  %v262_v1 = vpop.f32.mrf.mxu0 }
 0x33f   :  { %v263_v2 = vadd.f32 %v262_v1, %v1622_v61 }
 0x340   :  { %v1272_v3 = vpop.f32.mrf.mxu1  ;;  %v1277_v4 = vpop.f32.mrf.mxu0 }
 0x341   :  { %v272_v5 = vsel %vm268_vm6, %v263_v2, -inf }
 0x342   :  { %273 = vmax.xlane.f32.xlu0 %v272_v5  ;;  %v265_v6 = vpop.f32.mrf.mxu0 }
 0x344   :  { %v1278_v7 = vpop.f32.mrf.mxu0 }
 0x34f   :  { %440 = vrot.lane.b32.xlu1 %v1586_v41, %s1498_s1 }
 0x3c7   :  { %v271_v8 = vpop.xlane.xlu1 %270 }
 0x3c8   :  { %v275_v9 = vsub.f32 %v214_v60, %v271_v8 }
 0x3ca   :  { %v277_v10 = vmul.f32 1.442695, %v275_v9 }
 0x3cb   :  { %v274_v11 = vpop.xlane.xlu0 %273  ;;  %v441_v18 = vpop.permute.xlu1 %440 }
 0x3cc   :  { %1418 = vpow2.f32 %v277_v10  ;;  %v276_v12 = vsub.f32 %v263_v2, %v274_v11  ;;  %v446_v29 = vsel %vm172_vm2, %v441_v18, 0 }
 0x3ce   :  { %v279_v13 = vmul.f32 1.442695, %v276_v12 }
 0x3d0   :  { %1420 = vpow2.f32 %v279_v13 }
 0x3d9   :  { %v1419_v14 = vpop.eup %1418 }
 0x3da   :  { %v281_v15 = vsel %vm268_vm6, %v1419_v14, 0.0 }
 0x3db   :  { %282 = vadd.xlane.f32.xlu0 %v281_v15 }
 0x3dd   :  { %v1421_v16 = vpop.eup %1420 }
 0x3de   :  { %v284_v17 = vsel %vm268_vm6, %v1421_v16, 0.0 }
 0x3df   :  { %285 = vadd.xlane.f32.xlu1 %v284_v17 }
 0x3f0   :  { %388 = vrot.lane.b32.xlu1 %v1583_v38, %s1499_s18 }
 0x3f1   :  { %390 = vrot.lane.b32.xlu0 %v1583_v38, %s1498_s1 }
 0x3f4   :  { %438 = vrot.lane.b32.xlu1 %v1586_v41, %s1499_s18 }
 0x464   :  { %v283_v19 = vpop.xlane.xlu0 %282 }
 0x465   :  { %1422 = vrcp.f32 %v283_v19 }
 0x468   :  { %v286_v20 = vpop.xlane.xlu1 %285  ;;  %v391_v23 = vpop.permute.xlu0 %390 }
 0x469   :  { %1424 = vrcp.f32 %v286_v20  ;;  %v396_v26 = vsel %vm172_vm2, %v391_v23, 0 }
 0x46c   :  { %v389_v30 = vpop.permute.xlu1 %388 }
 0x470   :  { %v439_v31 = vpop.permute.xlu1 %438 }
 0x472   :  { %v1423_v21 = vpop.eup %1422 }
 0x473   :  { %v289_v22 = vmul.f32 %v1423_v21, %v1419_v14 }
 0x475   :  { %291 = vst.msk [vmem:[#allocation4] sm:$0xff] %vm268_vm6, %v289_v22  ;;  %v293_v24 = vpack.c.bf16 %v289_v22, %v289_v22 }
 0x476   :  { %v1425_v25 = vpop.eup %1424 }
 0x477   :  { %1282 = vmatmul.mubr.msk.bf16.vlgmr.msra.gmra.mxu1 %vm268_vm6, %v293_v24  ;;  %v290_v27 = vmul.f32 %v1425_v25, %v1421_v16 }
 0x478   :  { %1292 = vmatpush3.bf16.xpose.msra.mxu1 %v396_v26  ;;  %1293 = vmatprep.mubr.msk.bf16.mxu1 %vm1496_vm1, %v1495_v36 }
 0x479   :  { %292 = vst.msk [vmem:[#allocation4 + $0x20] sm:$0xff] %vm268_vm6, %v290_v27  ;;  %v294_v28 = vpack.c.bf16 %v290_v27, %v290_v27  ;;  %1303 = vmatprep.subr.bf16.mxu1 %v1495_v36 }
 0x47b   :  { %1288 = vmatmul.mubr.msk.bf16.vlgmr.msra.gmra.mxu0 %vm268_vm6, %v294_v28 }
 0x47c   :  { %1298 = vmatpush3.bf16.xpose.msra.mxu0 %v446_v29  ;;  %1299 = vmatprep.mubr.msk.bf16.mxu0 %vm1496_vm1, %v1495_v36 }
 0x47d   :  { %1309 = vmatprep.subr.bf16.mxu0 %v1495_v36 }
 0x47f   :  { %1294 = vmatmul.mubr.msk.bf16.vlgmr.msra.gmra.mxu1 %vm172_vm2, %v389_v30 }
 0x480   :  { %1305 = vmatprep.mubr.msk.bf16.mxu1 %vm1496_vm1, %v1495_v36 }
 0x483   :  { %1300 = vmatmul.mubr.msk.bf16.vlgmr.msra.gmra.mxu0 %vm172_vm2, %v439_v31 }
 0x484   :  { %1311 = vmatprep.mubr.msk.bf16.mxu0 %vm1496_vm1, %v1495_v36 }
 0x537   :  { %v1655_v32 = vpop.f32.mrf.mxu1 }
 0x539   :  { %v1283_v33 = vpop.f32.mrf.mxu1 }
 0x53b   :  { %v339_v34 = vpop.f32.mrf.mxu1  ;;  %v1657_v35 = vpop.f32.mrf.mxu0 }
 0x53d   :  { %v1284_v37 = vpop.f32.mrf.mxu1  ;;  %v1289_v39 = vpop.f32.mrf.mxu0 }
 0x53f   :  { %v385_v40 = vpop.f32.mrf.mxu0  ;;  %v432_v42 = vpop.f32.mrf.mxu1 }
 0x540   :  { %v433_v43 = vadd.f32 %v432_v42, %v1618_v57 }
 0x541   :  { %v1290_v44 = vpop.f32.mrf.mxu0  ;;  %v1295_v46 = vpop.f32.mrf.mxu1 }
 0x542   :  { %v488_v47 = vsel %vm268_vm6, %v433_v43, -inf }
 0x543   :  { %489 = vmax.xlane.f32.xlu0 %v488_v47  ;;  %v435_v49 = vpop.f32.mrf.mxu1  ;;  %v482_v50 = vpop.f32.mrf.mxu0 }
 0x544   :  { %v483_v51 = vadd.f32 %v482_v50, %v1622_v61 }
 0x545   :  { %v1296_v52 = vpop.f32.mrf.mxu1  ;;  %v1301_v53 = vpop.f32.mrf.mxu0 }
 0x546   :  { %v491_v54 = vsel %vm268_vm6, %v483_v51, -inf }
 0x547   :  { %492 = vmax.xlane.f32.xlu1 %v491_v54  ;;  %v485_v55 = vpop.f32.mrf.mxu0 }
 0x549   :  { %v1302_v56 = vpop.f32.mrf.mxu0 }
 0x558   :  { %565 = vrot.lane.b32.xlu1 %v1595_v48, %s1499_s18 }
 0x55c   :  { %615 = vrot.lane.b32.xlu1 %v1583_v38, %s1500_s19 }
 0x560   :  { %665 = vrot.lane.b32.xlu1 %v1586_v41, %s1500_s19 }
 0x564   :  { %663 = vrot.lane.b32.xlu1 %v1586_v41, %s1501_s20 }
 0x5cc   :  { %v490_v58 = vpop.xlane.xlu0 %489 }
 0x5cd   :  { %v494_v59 = vsub.f32 %v433_v43, %v490_v58 }
 0x5cf   :  { %v496_v60 = vmul.f32 1.442695, %v494_v59 }
 0x5d0   :  { %v493_v62 = vpop.xlane.xlu1 %492 }
 0x5d1   :  { %1426 = vpow2.f32 %v496_v60  ;;  %v495_v63 = vsub.f32 %v483_v51, %v493_v62 }
 0x5d3   :  { %v498_v0 = vmul.f32 1.442695, %v495_v63 }
 0x5d4   :  { %v566_v1 = vpop.permute.xlu1 %565 }
 0x5d5   :  { %1428 = vpow2.f32 %v498_v0  ;;  %v571_v2 = vsel %vm298_vm3, %v566_v1, 0 }
 0x5d6   :  { %1310 = vmatpush3.bf16.msra.mxu0 %v571_v2 }
 0x5d7   :  { %1321 = vmatprep.subr.bf16.mxu0 %v1495_v36 }
 0x5d8   :  { %v616_v12 = vpop.permute.xlu1 %615 }
 0x5d9   :  { %v621_v16 = vsel %vm172_vm2, %v616_v12, 0 }
 0x5dc   :  { %v666_v18 = vpop.permute.xlu1 %665 }
 0x5dd   :  { %v671_v20 = vsel %vm172_vm2, %v666_v18, 0 }
 0x5de   :  { %v1427_v3 = vpop.eup %1426 }
 0x5df   :  { %v500_v4 = vsel %vm268_vm6, %v1427_v3, 0.0 }
 0x5e0   :  { %501 = vadd.xlane.f32.xlu0 %v500_v4  ;;  %v664_v22 = vpop.permute.xlu1 %663 }
 0x5e2   :  { %v1429_v5 = vpop.eup %1428 }
 0x5e3   :  { %v503_v6 = vsel %vm268_vm6, %v1429_v5, 0.0 }
 0x5e4   :  { %504 = vadd.xlane.f32.xlu0 %v503_v6 }
 0x5fa   :  { %516 = vrot.lane.b32.xlu0 %v1591_v45, %s1499_s18 }
 0x5fe   :  { %613 = vrot.lane.b32.xlu0 %v1583_v38, %s1501_s20 }
 0x669   :  { %v502_v7 = vpop.xlane.xlu0 %501 }
 0x66a   :  { %1430 = vrcp.f32 %v502_v7 }
 0x66d   :  { %v505_v8 = vpop.xlane.xlu0 %504 }
 0x66e   :  { %1432 = vrcp.f32 %v505_v8 }
 0x671   :  { %v517_v9 = vpop.permute.xlu0 %516 }
 0x672   :  { %v522_v10 = vsel %vm298_vm3, %v517_v9, 0 }
 0x673   :  { %1304 = vmatpush3.bf16.msra.mxu1 %v522_v10 }
 0x674   :  { %1315 = vmatprep.subr.bf16.mxu1 %v1495_v36 }
 0x675   :  { %v614_v21 = vpop.permute.xlu0 %613 }
 0x677   :  { %v1431_v11 = vpop.eup %1430 }
 0x678   :  { %v508_v13 = vmul.f32 %v1431_v11, %v1427_v3 }
 0x67a   :  { %511 = vst.msk [vmem:[#allocation4 + $0x8] sm:$0xff] %vm268_vm6, %v508_v13  ;;  %v513_v14 = vpack.c.bf16 %v508_v13, %v508_v13 }
 0x67b   :  { %v1433_v15 = vpop.eup %1432 }
 0x67c   :  { %1306 = vmatmul.mubr.msk.bf16.vlgmr.msra.gmra.mxu1 %vm268_vm6, %v513_v14  ;;  %v509_v17 = vmul.f32 %v1433_v15, %v1429_v5 }
 0x67d   :  { %1316 = vmatpush3.bf16.xpose.msra.mxu1 %v621_v16  ;;  %1317 = vmatprep.mubr.msk.bf16.mxu1 %vm1496_vm1, %v1495_v36 }
 0x67e   :  { %512 = vst.msk [vmem:[#allocation4 + $0x28] sm:$0xff] %vm268_vm6, %v509_v17  ;;  %v514_v19 = vpack.c.bf16 %v509_v17, %v509_v17  ;;  %1327 = vmatprep.subr.bf16.mxu1 %v1495_v36 }
 0x680   :  { %1312 = vmatmul.mubr.msk.bf16.vlgmr.msra.gmra.mxu0 %vm268_vm6, %v514_v19 }
 0x681   :  { %1322 = vmatpush3.bf16.xpose.msra.mxu0 %v671_v20  ;;  %1323 = vmatprep.mubr.msk.bf16.mxu0 %vm1496_vm1, %v1495_v36 }
 0x682   :  { %1333 = vmatprep.subr.bf16.mxu0 %v1495_v36 }
 0x684   :  { %1318 = vmatmul.mubr.msk.bf16.vlgmr.msra.gmra.mxu1 %vm172_vm2, %v614_v21 }
 0x685   :  { %1329 = vmatprep.mubr.msk.bf16.mxu1 %vm1496_vm1, %v1495_v36 }
 0x688   :  { %1324 = vmatmul.mubr.msk.bf16.vlgmr.msra.gmra.mxu0 %vm172_vm2, %v664_v22 }
 0x689   :  { %1335 = vmatprep.mubr.msk.bf16.mxu0 %vm1496_vm1, %v1495_v36 }
 0x73c   :  { %v1699_v23 = vpop.f32.mrf.mxu1 }
 0x73e   :  { %v1307_v24 = vpop.f32.mrf.mxu1 }
 0x740   :  { %v561_v25 = vpop.f32.mrf.mxu1  ;;  %v1701_v26 = vpop.f32.mrf.mxu0 }
 0x741   :  { %v1389_v27 = vpack.i.bf16 %v1701_v26, %v1699_v23 }
 0x742   :  { %v1308_v28 = vpop.f32.mrf.mxu1  ;;  %v1313_v29 = vpop.f32.mrf.mxu0 }
 0x744   :  { %v610_v30 = vpop.f32.mrf.mxu0  ;;  %v657_v31 = vpop.f32.mrf.mxu1 }
 0x745   :  { %v658_v33 = vadd.f32 %v657_v31, %v1618_v57 }
 0x746   :  { %v1314_v34 = vpop.f32.mrf.mxu0  ;;  %v1319_v37 = vpop.f32.mrf.mxu1 }
 0x747   :  { %v713_v39 = vsel %vm268_vm6, %v658_v33, -inf }
 0x748   :  { %714 = vmax.xlane.f32.xlu0 %v713_v39  ;;  %v660_v40 = vpop.f32.mrf.mxu1  ;;  %v707_v42 = vpop.f32.mrf.mxu0 }
 0x749   :  { %v708_v43 = vadd.f32 %v707_v42, %v1622_v61 }
 0x74a   :  { %v1320_v44 = vpop.f32.mrf.mxu1  ;;  %v1325_v46 = vpop.f32.mrf.mxu0 }
 0x74b   :  { %v716_v47 = vsel %vm268_vm6, %v708_v43, -inf }
 0x74c   :  { %717 = vmax.xlane.f32.xlu1 %v716_v47  ;;  %v710_v49 = vpop.f32.mrf.mxu0 }
 0x74e   :  { %v1326_v50 = vpop.f32.mrf.mxu0 }
 0x75d   :  { %788 = vrot.lane.b32.xlu1 %v1595_v48, %s1501_s20 }
 0x761   :  { %838 = vrot.lane.b32.xlu1 %v1583_v38, %s1502_s21 }
 0x765   :  { %888 = vrot.lane.b32.xlu1 %v1586_v41, %s1502_s21 }
 0x769   :  { %886 = vrot.lane.b32.xlu1 %v1586_v41, %s1503_s22 }
 0x7d1   :  { %v715_v51 = vpop.xlane.xlu0 %714 }
 0x7d2   :  { %v719_v52 = vsub.f32 %v658_v33, %v715_v51 }
 0x7d4   :  { %v721_v53 = vmul.f32 1.442695, %v719_v52 }
 0x7d5   :  { %v718_v54 = vpop.xlane.xlu1 %717 }
 0x7d6   :  { %1434 = vpow2.f32 %v721_v53  ;;  %v720_v55 = vsub.f32 %v708_v43, %v718_v54 }
 0x7d8   :  { %v723_v56 = vmul.f32 1.442695, %v720_v55 }
 0x7d9   :  { %v789_v58 = vpop.permute.xlu1 %788 }
 0x7da   :  { %1436 = vpow2.f32 %v723_v56  ;;  %v794_v59 = vsel %vm298_vm3, %v789_v58, 0 }
 0x7db   :  { %1334 = vmatpush3.bf16.msra.mxu0 %v794_v59 }
 0x7dc   :  { %1345 = vmatprep.subr.bf16.mxu0 %v1495_v36 }
 0x7dd   :  { %v839_v5 = vpop.permute.xlu1 %838 }
 0x7de   :  { %v844_v9 = vsel %vm172_vm2, %v839_v5, 0 }
 0x7e1   :  { %v889_v10 = vpop.permute.xlu1 %888 }
 0x7e2   :  { %v894_v12 = vsel %vm172_vm2, %v889_v10, 0 }
 0x7e3   :  { %v1435_v60 = vpop.eup %1434 }
 0x7e4   :  { %v725_v62 = vsel %vm268_vm6, %v1435_v60, 0.0 }
 0x7e5   :  { %726 = vadd.xlane.f32.xlu0 %v725_v62  ;;  %v887_v14 = vpop.permute.xlu1 %886 }
 0x7e7   :  { %v1437_v63 = vpop.eup %1436 }
 0x7e8   :  { %v728_v41 = vsel %vm268_vm6, %v1437_v63, 0.0 }
 0x7e9   :  { %729 = vadd.xlane.f32.xlu0 %v728_v41  ;;  %v1411_v41 = vld [vmem:[%s1804_s5 + $0x10] sm:$0xff]  }
 0x7ff   :  { %740 = vrot.lane.b32.xlu0 %v1591_v45, %s1501_s20 }
 0x803   :  { %836 = vrot.lane.b32.xlu0 %v1583_v38, %s1503_s22 }
 0x86e   :  { %v727_v0 = vpop.xlane.xlu0 %726 }
 0x86f   :  { %1438 = vrcp.f32 %v727_v0  ;;  %v1412_v0 = vld [vmem:[%s1804_s5 + $0x8] sm:$0xff]  }
 0x872   :  { %v730_v1 = vpop.xlane.xlu0 %729 }
 0x873   :  { %1440 = vrcp.f32 %v730_v1  ;;  %v1413_v1 = vld [vmem:[%s1804_s5] sm:$0xff]  }
 0x876   :  { %v741_v2 = vpop.permute.xlu0 %740 }
 0x877   :  { %v746_v3 = vsel %vm298_vm3, %v741_v2, 0 }
 0x878   :  { %1328 = vmatpush3.bf16.msra.mxu1 %v746_v3 }
 0x879   :  { %1339 = vmatprep.subr.bf16.mxu1 %v1495_v36 }
 0x87a   :  { %v837_v13 = vpop.permute.xlu0 %836 }
 0x87c   :  { %v1439_v4 = vpop.eup %1438 }
 0x87d   :  { %v733_v6 = vmul.f32 %v1439_v4, %v1435_v60 }
 0x87f   :  { %736 = vst.msk [vmem:[#allocation4 + $0x10] sm:$0xff] %vm268_vm6, %v733_v6  ;;  %v738_v7 = vpack.c.bf16 %v733_v6, %v733_v6 }
 0x880   :  { %v1441_v8 = vpop.eup %1440 }
 0x881   :  { %1330 = vmatmul.mubr.msk.bf16.vlgmr.msra.gmra.mxu1 %vm268_vm6, %v738_v7  ;;  %v734_v38 = vmul.f32 %v1441_v8, %v1437_v63  ;;  %v1410_v63 = vld [vmem:[%s1804_s5 + $0x18] sm:$0xff]   ;;  %s1504_s5 = smov [#allocation4]  }
 0x882   :  { %1340 = vmatpush3.bf16.xpose.msra.mxu1 %v844_v9  ;;  %1341 = vmatprep.mubr.msk.bf16.mxu1 %vm1496_vm1, %v1495_v36  ;;  %s1187_s30 = sshll.u32 %s1504_s5, 4  ;;  %s1188_s30 = int_to_ptr.vmem [resolvable:$true] %s1187_s30 }
 0x883   :  { %737 = vst.msk [vmem:[#allocation4 + $0x30] sm:$0xff] %vm268_vm6, %v734_v38  ;;  %v739_v11 = vpack.c.bf16 %v734_v38, %v734_v38  ;;  %1351 = vmatprep.subr.bf16.mxu1 %v1495_v36  ;;  %s1450_s8 = scalar_lea.vmem %s1188_s30, 1024  ;;  %p1455_p1 = scmp.lt.s32.totalorder %s1188_s30, %s1188_s30 }
 0x884   :  { %p1451_p0 = scmp.ne.s32.totalorder %s1188_s30, %s1450_s8  ;;  %p1456_p2 = scmp.lt.s32.totalorder %s1450_s8, %s1450_s8 }
 0x885   :  { %1336 = vmatmul.mubr.msk.bf16.vlgmr.msra.gmra.mxu0 %vm268_vm6, %v739_v11 }
 0x886   :  { %1346 = vmatpush3.bf16.xpose.msra.mxu0 %v894_v12  ;;  %1347 = vmatprep.mubr.msk.bf16.mxu0 %vm1496_vm1, %v1495_v36  ;;  %p1457_p3 = por %p1456_p2, %p1455_p1 }
 0x887   :  { %1357 = vmatprep.subr.bf16.mxu0 %v1495_v36 }
 0x888   :  { %p1458_p4 = pnand %p1457_p3, %p1451_p0 }
 0x889   :  { %1342 = vmatmul.mubr.msk.bf16.vlgmr.msra.gmra.mxu1 %vm172_vm2, %v837_v13 }
 0x88a   :  { %1353 = vmatprep.mubr.msk.bf16.mxu1 %vm1496_vm1, %v1495_v36 }
 0x88d   :  { %1348 = vmatmul.mubr.msk.bf16.vlgmr.msra.gmra.mxu0 %vm172_vm2, %v887_v14 }
 0x88e   :  { %1359 = vmatprep.mubr.msk.bf16.mxu0 %vm1496_vm1, %v1495_v36 }
 0x941   :  { %v782_v15 = vpop.f32.mrf.mxu1 }
 0x943   :  { %v1331_v16 = vpop.f32.mrf.mxu1 }
 0x945   :  { %v785_v17 = vpop.f32.mrf.mxu1  ;;  %v830_v18 = vpop.f32.mrf.mxu0 }
 0x947   :  { %v1332_v19 = vpop.f32.mrf.mxu1  ;;  %v1337_v20 = vpop.f32.mrf.mxu0 }
 0x949   :  { %v833_v21 = vpop.f32.mrf.mxu0  ;;  %v880_v22 = vpop.f32.mrf.mxu1 }
 0x94a   :  { %v881_v24 = vadd.f32 %v880_v22, %v1618_v57  ;;  %v1394_v57 = vpack.i.bf16 %v830_v18, %v782_v15 }
 0x94b   :  { %v1338_v25 = vpop.f32.mrf.mxu0  ;;  %v1343_v28 = vpop.f32.mrf.mxu1 }
 0x94c   :  { %v936_v29 = vsel %vm268_vm6, %v881_v24, -inf }
 0x94d   :  { %937 = vmax.xlane.f32.xlu0 %v936_v29  ;;  %v883_v30 = vpop.f32.mrf.mxu1  ;;  %v930_v31 = vpop.f32.mrf.mxu0 }
 0x94e   :  { %v931_v33 = vadd.f32 %v930_v31, %v1622_v61 }
 0x94f   :  { %v1344_v34 = vpop.f32.mrf.mxu1  ;;  %v1349_v37 = vpop.f32.mrf.mxu0 }
 0x950   :  { %v939_v39 = vsel %vm268_vm6, %v931_v33, -inf }
 0x951   :  { %940 = vmax.xlane.f32.xlu1 %v939_v39  ;;  %v933_v40 = vpop.f32.mrf.mxu0 }
 0x953   :  { %v1350_v42 = vpop.f32.mrf.mxu0 }
 0x962   :  { %1011 = vrot.lane.b32.xlu1 %v1595_v48, %s1503_s22 }
 0x966   :  { %1390 = vrot.lane.b32.xlu1 %v1389_v27, %s1502_s21 }
 0x96a   :  { %1395 = vrot.lane.b32.xlu1 %v1394_v57, %s1500_s19 }
 0x9d6   :  { %v938_v43 = vpop.xlane.xlu0 %937 }
 0x9d7   :  { %v942_v61 = vsub.f32 %v881_v24, %v938_v43 }
 0x9d9   :  { %v944_v44 = vmul.f32 1.442695, %v942_v61 }
 0x9da   :  { %v941_v46 = vpop.xlane.xlu1 %940 }
 0x9db   :  { %1442 = vpow2.f32 %v944_v44  ;;  %v943_v47 = vsub.f32 %v931_v33, %v941_v46 }
 0x9dd   :  { %v946_v49 = vmul.f32 1.442695, %v943_v47 }
 0x9de   :  { %v1012_v50 = vpop.permute.xlu1 %1011 }
 0x9df   :  { %1444 = vpow2.f32 %v946_v49  ;;  %v1017_v51 = vsel %vm298_vm3, %v1012_v50, 0 }
 0x9e0   :  { %1358 = vmatpush3.bf16.msra.mxu0 %v1017_v51 }
 0x9e2   :  { %v1391_v10 = vpop.permute.xlu1 %1390 }
 0x9e3   :  { %v1393_v12 = vunpack.i.h.bf16 %v1391_v10 }
 0x9e5   :  { %v1084_v16 = vsel %vm172_vm2, %v1657_v35, %v1393_v12 }
 0x9e6   :  { %v1396_v11 = vpop.permute.xlu1 %1395 }
 0x9e7   :  { %v1398_v13 = vunpack.i.h.bf16 %v1396_v11  ;;  %v1397_v14 = vunpack.i.l.bf16 %v1396_v11 }
 0x9e8   :  { %v1443_v48 = vpop.eup %1442 }
 0x9e9   :  { %v948_v52 = vsel %vm268_vm6, %v1443_v48, 0.0  ;;  %v1086_v21 = vsel %vm30_vm0, %v1084_v16, %v1398_v13 }
 0x9ea   :  { %949 = vadd.xlane.f32.xlu0 %v948_v52 }
 0x9ec   :  { %v1445_v23 = vpop.eup %1444 }
 0x9ed   :  { %v951_v26 = vsel %vm268_vm6, %v1445_v23, 0.0 }
 0x9ee   :  { %952 = vadd.xlane.f32.xlu0 %v951_v26 }
 0xa04   :  { %963 = vrot.lane.b32.xlu0 %v1591_v45, %s1503_s22 }
 0xa73   :  { %v950_v27 = vpop.xlane.xlu0 %949 }
 0xa74   :  { %1446 = vrcp.f32 %v950_v27 }
 0xa77   :  { %v953_v53 = vpop.xlane.xlu0 %952 }
 0xa78   :  { %1448 = vrcp.f32 %v953_v53 }
 0xa7b   :  { %v964_v54 = vpop.permute.xlu0 %963 }
 0xa7c   :  { %v969_v55 = vsel %vm298_vm3, %v964_v54, 0 }
 0xa7d   :  { %1352 = vmatpush3.bf16.msra.mxu1 %v969_v55 }
 0xa7e   :  { %1363 = vmatprep.subr.bf16.mxu1 %v1495_v36 }
 0xa81   :  { %v1447_v56 = vpop.eup %1446 }
 0xa82   :  { %v956_v58 = vmul.f32 %v1447_v56, %v1443_v48 }
 0xa84   :  { %959 = vst.msk [vmem:[#allocation4 + $0x18] sm:$0xff] %vm268_vm6, %v956_v58  ;;  %v961_v59 = vpack.c.bf16 %v956_v58, %v956_v58 }
 0xa85   :  { %v1449_v60 = vpop.eup %1448 }
 0xa86   :  { %1354 = vmatmul.mubr.msk.bf16.vlgmr.msra.gmra.mxu1 %vm268_vm6, %v961_v59  ;;  %v957_v62 = vmul.f32 %v1449_v60, %v1445_v23 }
 0xa87   :  { %1371 = vmatprep.mubr.msk.bf16.mxu1 %vm1496_vm1, %v1495_v36  ;;  %1364 = vmatpush3.bf16.msra.mxu1 %v1410_v63 }
 0xa88   :  { %960 = vst.msk [vmem:[#allocation4 + $0x38] sm:$0xff] %vm268_vm6, %v957_v62  ;;  %v962_v45 = vpack.c.bf16 %v957_v62, %v957_v62  ;;  %1365 = vmatprep.subr.bf16.mxu1 %v1495_v36 }
 0xa8a   :  { %1360 = vmatmul.mubr.msk.bf16.vlgmr.msra.gmra.mxu0 %vm268_vm6, %v962_v45 }
 0xa8b   :  { %1366 = vmatpush3.bf16.msra.mxu1 %v1411_v41 }
 0xa8c   :  { %1367 = vmatprep.subr.bf16.mxu1 %v1495_v36 }
 0xa8f   :  { %1368 = vmatpush3.bf16.msra.mxu1 %v1412_v0 }
 0xa90   :  { %1369 = vmatprep.subr.bf16.mxu1 %v1495_v36  ;;  %v1392_v36 = vunpack.i.l.bf16 %v1391_v10 }
 0xa92   :  { %v1083_v17 = vsel %vm172_vm2, %v1655_v32, %v1392_v36 }
 0xa93   :  { %1370 = vmatpush3.bf16.msra.mxu1 %v1413_v1  ;;  %v1085_v20 = vsel %vm30_vm0, %v1083_v17, %v1397_v14 }
 0xb46   :  { %v1005_v2 = vpop.f32.mrf.mxu1 }
 0xb48   :  { %v1355_v3 = vpop.f32.mrf.mxu1 }
 0xb4a   :  { %v1008_v4 = vpop.f32.mrf.mxu1  ;;  %v1053_v5 = vpop.f32.mrf.mxu0 }
 0xb4b   :  { %v1399_v6 = vpack.i.bf16 %v1053_v5, %v1005_v2 }
 0xb4c   :  { %v1356_v7 = vpop.f32.mrf.mxu1  ;;  %v1361_v8 = vpop.f32.mrf.mxu0 }
 0xb4d   :  { %1400 = vrot.lane.b32.xlu0 %v1399_v6, %s1498_s1 }
 0xb4e   :  { %v1056_v9 = vpop.f32.mrf.mxu0 }
 0xb50   :  { %v1362_v38 = vpop.f32.mrf.mxu0 }
 0xbbf   :  { %v1401_v15 = vpop.permute.xlu0 %1400 }
 0xbc0   :  { %v1403_v18 = vunpack.i.h.bf16 %v1401_v15  ;;  %v1402_v19 = vunpack.i.l.bf16 %v1401_v15 }
 0xbc2   :  { %v1089_v22 = vsel %vm1087_vm7, %v1086_v21, %v1403_v18  ;;  %v1088_v24 = vsel %vm1087_vm7, %v1085_v20, %v1402_v19 }
 0xbc3   :  { %v1090_v25 = vpack.c.bf16 %v1089_v22, %v1088_v24 }
 0xbc5   :  { %1372 = vmatmul.mubr.msk.bf16.vlgmr.msra.gmra.mxu1 %vm1123_vm8, %v1090_v25 }
 0xbc6   :  { %1461 = shalt.err (!%p1458_p4)
}
 0xbc7   :  { %s1505_s9 = smov 128   ;;  %s1506_s10 = smov 8  }
 0xbc8   :  { %1193 = dma.vmem_to_hbm [thread:$0]  %s1188_s30, 1024, %s1806_s7, [#allocation5], %s1505_s9, %s1505_s9, %s1506_s10  }
 0xbc9   :  { %s1507_s13 = smov [#allocation2]  }
 0xbca   :  { %s1175_s4 = sshll.u32 %s1507_s13, 4  ;;  %s1176_s4 = int_to_ptr.vmem [resolvable:$true] %s1175_s4 }
 0xbcb   :  { %s1470_s14 = scalar_lea.vmem %s1176_s4, 256  ;;  %p1475_p6 = scmp.lt.s32.totalorder %s1176_s4, %s1176_s4 }
 0xbcc   :  { %p1471_p5 = scmp.ne.s32.totalorder %s1176_s4, %s1470_s14  ;;  %p1476_p7 = scmp.lt.s32.totalorder %s1470_s14, %s1470_s14 }
 0xbce   :  { %p1477_p8 = por %p1476_p7, %p1475_p6 }
 0xbd0   :  { %p1478_p9 = pnand %p1477_p8, %p1471_p5 }
 0xc85   :  { %v1161_v32 = vpop.f32.mrf.mxu1 }
 0xc86   :  { %1168 = vst.msk [vmem:[#allocation2] sm:$0xff] %vm30_vm0, %v1161_v32 }
 0xc87   :  { %v1373_v35 = vpop.f32.mrf.mxu1 }
 0xc89   :  { %v1164_v28 = vpop.f32.mrf.mxu1 }
 0xc8a   :  { %1169 = vst.msk [vmem:[#allocation2 + $0x8] sm:$0xff] %vm30_vm0, %v1164_v28 }
 0xc8b   :  { %v1374_v29 = vpop.f32.mrf.mxu1 }
 0xc8c   :  { %1481 = shalt.err (!%p1478_p9)
}
 0xc8d   :  { %1181 = dma.vmem_to_hbm [thread:$0]  %s1176_s4, 256, %s1805_s6, [#allocation3], %s1505_s9, %s1505_s9, %s1506_s10  }
 0xc8e   :  { %1490 = dma.done.wait [#allocation3], 256  }
 0xc8f   :  { %1491 = vsyncadd [#allocation3], 4294967040 }
 0xc90   :  { %1492 = dma.done.wait [#allocation5], 1024  }
 0xc91   :  { %1493 = vsyncadd [#allocation5], 4294966272 }
 0xc92   :  { %1200 = vsyncpa [#allocation3], 1 }
 0xc93   :  { %1201 = vsyncpa [#allocation5], 1 }

</bundles_post_ra>
